<compile_context>
chip_gen: v5e
topology: v5e:2x2
jax: 0.10.0
libtpu: 0.0.40
codegen_flags: <defaults>
</compile_context>

<pallas_src>
import jax
import jax.numpy as jnp
from jax.experimental import pallas as pl
from jax.experimental.pallas import tpu as pltpu

BN_EPS = 1e-5
LANE = 128


def _round_up(n, m):
    return (n + m - 1) // m * m


# ---------------------------------------------------------------------------
# In-kernel BatchNorm1d (training mode), fused scale/shift form, f32 math.
# ---------------------------------------------------------------------------
def _bn_train(h, gamma, beta):
    mean = jnp.mean(h, axis=0, keepdims=True)
    mean_sq = jnp.mean(h * h, axis=0, keepdims=True)
    var = jnp.maximum(mean_sq - mean * mean, 0.0)
    scale = gamma * jax.lax.rsqrt(var + BN_EPS)          # rsqrt -> EUP slot
    shift = beta - mean * scale
    return h * scale + shift


# ---------------------------------------------------------------------------
# Kernels
# ---------------------------------------------------------------------------
def basic_block_proj_kernel(x_ref, w1s_ref, w2_ref, bn_ref, o_ref):
    """Projection shortcut: fc1 and shortcut fc fused into one matmul."""
    np_ = o_ref.shape[1]
    x = x_ref[...]                                        # (B, Kp) f32
    xb = x.astype(jnp.bfloat16)

    # Fused fc1 + shortcut projection: (B, Kp) @ (Kp, 2*Np)  -- lane-dense.
    h_all = jnp.dot(xb, w1s_ref[...], preferred_element_type=jnp.float32)
    h1 = h_all[:, :np_]
    sc = h_all[:, np_:]

    g1, be1 = bn_ref[0:1, :], bn_ref[1:2, :]
    g2, be2 = bn_ref[2:3, :], bn_ref[3:4, :]
    gs, bes = bn_ref[4:5, :], bn_ref[5:6, :]

    h1 = jnp.maximum(_bn_train(h1, g1, be1), 0.0)         # relu(bn1(fc1 x))
    h2 = jnp.dot(h1.astype(jnp.bfloat16), w2_ref[...],
                 preferred_element_type=jnp.float32)      # fc2
    h2 = _bn_train(h2, g2, be2)                           # bn2
    sc = _bn_train(sc, gs, bes)                           # bn_s(fc_s x)
    o_ref[...] = jnp.maximum(h2 + sc, 0.0)                # relu(out + shortcut)


def basic_block_id_kernel(x_ref, w1_ref, w2_ref, bn_ref, o_ref):
    """Identity shortcut (in_features == out_features)."""
    x = x_ref[...]                                        # (B, Np) f32
    h1 = jnp.dot(x.astype(jnp.bfloat16), w1_ref[...],
                 preferred_element_type=jnp.float32)

    g1, be1 = bn_ref[0:1, :], bn_ref[1:2, :]
    g2, be2 = bn_ref[2:3, :], bn_ref[3:4, :]

    h1 = jnp.maximum(_bn_train(h1, g1, be1), 0.0)
    h2 = jnp.dot(h1.astype(jnp.bfloat16), w2_ref[...],
                 preferred_element_type=jnp.float32)
    h2 = _bn_train(h2, g2, be2)
    o_ref[...] = jnp.maximum(h2 + x, 0.0)


# ---------------------------------------------------------------------------
# Wrapper: pad to lane-dense shapes, fuse/pack operands, call the kernel.
# ---------------------------------------------------------------------------
def _pad2(a, rows, cols):
    r, c = a.shape
    if r == rows and c == cols:
        return a
    return jnp.pad(a, ((0, rows - r), (0, cols - c)))


def _pad1(v, n):
    if v.shape[0] == n:
        return v
    return jnp.pad(v, (0, n - v.shape[0]))


def _prepare_operands(x, params):
    B, K = x.shape
    N = params["w1"].shape[0]                 # PyTorch layout: [out, in]
    Kp = _round_up(K, LANE)
    Np = _round_up(N, LANE)
    has_proj = "ws" in params

    xp = _pad2(x.astype(jnp.float32), B, Kp)

    # Weights: [out,in] -> [in,out], zero-pad to lane-dense, cast bf16 for MXU.
    # Biases b1/b2/bs are intentionally dropped (cancelled by training-mode BN).
    w1 = _pad2(params["w1"].T, Kp, Np)
    w2 = _pad2(params["w2"].T, Np, Np).astype(jnp.bfloat16)

    bn_rows = [params["g1"], params["be1"], params["g2"], params["be2"]]
    if has_proj:
        ws = _pad2(params["ws"].T, Kp, Np)
        w1s = jnp.concatenate([w1, ws], axis=1).astype(jnp.bfloat16)   # (Kp, 2*Np)
        bn_rows += [params["gs"], params["bes"]]
    else:
        w1s = w1.astype(jnp.bfloat16)
    bn = jnp.stack([_pad1(v, Np).astype(jnp.float32) for v in bn_rows], axis=0)

    return xp, w1s, w2, bn, B, N, Kp, Np, has_proj


def basic_block(x, params):
    xp, w1s, w2, bn, B, N, Kp, Np, has_proj = _prepare_operands(x, params)
    kernel = basic_block_proj_kernel if has_proj else basic_block_id_kernel

    flops = 2 * B * (Kp * w1s.shape[1] + Np * Np)
    bytes_accessed = (xp.size * 4 + w1s.size * 2 + w2.size * 2
                      + bn.size * 4 + B * Np * 4)
    cost = pl.CostEstimate(flops=flops,
                           transcendentals=(bn.shape[0] // 2) * Np,
                           bytes_accessed=bytes_accessed)

    vmem = pl.BlockSpec(memory_space=pltpu.MemorySpace.VMEM)
    out = pl.pallas_call(
        kernel,
        out_shape=jax.ShapeDtypeStruct((B, Np), jnp.float32),
        in_specs=[vmem, vmem, vmem, vmem],
        out_specs=vmem,
        cost_estimate=cost,
    )(xp, w1s, w2, bn)
    return out[:, :N] if N != Np else out


# ---------------------------------------------------------------------------
# Param init (PyTorch layout) and pure-JAX f32 reference (keeps biases, which
# proves the in-kernel bias removal is exact).
# ---------------------------------------------------------------------------
def init_params(key, in_features, out_features):
    ks = jax.random.split(key, 6)

    def linear(kw, kb, fan_in, fan_out):
        bound = 1.0 / jnp.sqrt(fan_in)
        w = jax.random.uniform(kw, (fan_out, fan_in), jnp.float32, -bound, bound)
        b = jax.random.uniform(kb, (fan_out,), jnp.float32, -bound, bound)
        return w, b

    p = {}
    p["w1"], p["b1"] = linear(ks[0], ks[1], in_features, out_features)
    p["g1"] = jnp.ones((out_features,), jnp.float32)
    p["be1"] = jnp.zeros((out_features,), jnp.float32)
    p["w2"], p["b2"] = linear(ks[2], ks[3], out_features, out_features)
    p["g2"] = jnp.ones((out_features,), jnp.float32)
    p["be2"] = jnp.zeros((out_features,), jnp.float32)
    if in_features != out_features:
        p["ws"], p["bs"] = linear(ks[4], ks[5], in_features, out_features)
        p["gs"] = jnp.ones((out_features,), jnp.float32)
        p["bes"] = jnp.zeros((out_features,), jnp.float32)
    return p


def _bn_ref(h, gamma, beta):
    mean = jnp.mean(h, axis=0, keepdims=True)
    var = jnp.mean((h - mean) ** 2, axis=0, keepdims=True)
    return gamma * (h - mean) * jax.lax.rsqrt(var + BN_EPS) + beta


def reference(x, p):
    h = jnp.maximum(_bn_ref(x @ p["w1"].T + p["b1"], p["g1"], p["be1"]), 0.0)
    h2 = _bn_ref(h @ p["w2"].T + p["b2"], p["g2"], p["be2"])
    sc = x
    if "ws" in p:
        sc = _bn_ref(x @ p["ws"].T + p["bs"], p["gs"], p["bes"])
    return jnp.maximum(h2 + sc, 0.0)


if __name__ == "__main__":
    key = jax.random.PRNGKey(0)
    kx, kp1, kp2 = jax.random.split(key, 3)

    # Case 1: projection shortcut (in_features != out_features).
    B, IN_F, OUT_F = 8, 32, 64
    x = jax.random.normal(kx, (B, IN_F), jnp.float32)
    params = init_params(kp1, IN_F, OUT_F)
    out = jax.block_until_ready(basic_block(x, params))
    ref = reference(x, params)
    assert out.shape == (B, OUT_F)
    # bf16 MXU operands vs f32 reference -> loosened tolerance.
    assert jnp.allclose(out, ref, atol=5e-2, rtol=5e-2)

    # Case 2: identity shortcut (in_features == out_features).
    params_id = init_params(kp2, IN_F, IN_F)
    out_id = jax.block_until_ready(basic_block(x, params_id))
    ref_id = reference(x, params_id)
    assert out_id.shape == (B, IN_F)
    assert jnp.allclose(out_id, ref_id, atol=5e-2, rtol=5e-2)

    print("KERNEL_OK")
</pallas_src>

<mosaic_0001>
module attributes {stable_mosaic.version = 11 : i64} {
  func.func @basic_block_proj_kernel(%arg0: memref<8x128xf32, #tpu.memory_space<vmem>>, %arg1: memref<128x256xbf16, #tpu.memory_space<vmem>>, %arg2: memref<128x128xbf16, #tpu.memory_space<vmem>>, %arg3: memref<6x128xf32, #tpu.memory_space<vmem>>, %arg4: memref<8x128xf32, #tpu.memory_space<vmem>>) attributes {dimension_semantics = [], scalar_prefetch = 0 : i64, scratch_operands = 0 : i64, tpu.core_type = #tpu.core_type<tc>} {
    %c0 = arith.constant 0 : index
    %c0_0 = arith.constant 0 : index
    %0 = vector.load %arg0[%c0, %c0_0] : memref<8x128xf32, #tpu.memory_space<vmem>>, vector<8x128xf32>
    %1 = arith.truncf %0 : vector<8x128xf32> to vector<8x128xbf16>
    %c0_1 = arith.constant 0 : index
    %c0_2 = arith.constant 0 : index
    %2 = vector.load %arg1[%c0_1, %c0_2] : memref<128x256xbf16, #tpu.memory_space<vmem>>, vector<128x256xbf16>
    %cst = arith.constant dense<0.000000e+00> : vector<8x256xf32>
    %3 = tpu.matmul %1, %2, %cst {dimension_numbers = #tpu.dot_dimension_numbers<[1], [0], [0], [1], [0, 0, 1, 1], [], []>} : vector<8x128xbf16>, vector<128x256xbf16>, vector<8x256xf32> -> vector<8x256xf32>
    %4 = vector.extract_strided_slice %3 {offsets = [0, 0], sizes = [8, 128], strides = [1, 1]} : vector<8x256xf32> to vector<8x128xf32>
    %5 = vector.extract_strided_slice %3 {offsets = [0, 128], sizes = [8, 128], strides = [1, 1]} : vector<8x256xf32> to vector<8x128xf32>
    %c0_3 = arith.constant 0 : index
    %c0_4 = arith.constant 0 : index
    %6 = vector.load %arg3[%c0_3, %c0_4] : memref<6x128xf32, #tpu.memory_space<vmem>>, vector<1x128xf32>
    %c1 = arith.constant 1 : index
    %c0_5 = arith.constant 0 : index
    %7 = vector.load %arg3[%c1, %c0_5] : memref<6x128xf32, #tpu.memory_space<vmem>>, vector<1x128xf32>
    %c2 = arith.constant 2 : index
    %c0_6 = arith.constant 0 : index
    %8 = vector.load %arg3[%c2, %c0_6] : memref<6x128xf32, #tpu.memory_space<vmem>>, vector<1x128xf32>
    %c3 = arith.constant 3 : index
    %c0_7 = arith.constant 0 : index
    %9 = vector.load %arg3[%c3, %c0_7] : memref<6x128xf32, #tpu.memory_space<vmem>>, vector<1x128xf32>
    %c4 = arith.constant 4 : index
    %c0_8 = arith.constant 0 : index
    %10 = vector.load %arg3[%c4, %c0_8] : memref<6x128xf32, #tpu.memory_space<vmem>>, vector<1x128xf32>
    %c5 = arith.constant 5 : index
    %c0_9 = arith.constant 0 : index
    %11 = vector.load %arg3[%c5, %c0_9] : memref<6x128xf32, #tpu.memory_space<vmem>>, vector<1x128xf32>
    %cst_10 = arith.constant dense<0.000000e+00> : vector<128xf32>
    %12 = vector.multi_reduction <add>, %4, %cst_10 [0] : vector<8x128xf32> to vector<128xf32>
    %13 = vector.shape_cast %12 : vector<128xf32> to vector<1x128xf32>
    %cst_11 = arith.constant 8.000000e+00 : f32
    %14 = vector.broadcast %cst_11 : f32 to vector<1x128xf32>
    %15 = arith.divf %13, %14 : vector<1x128xf32>
    %16 = arith.mulf %4, %4 : vector<8x128xf32>
    %cst_12 = arith.constant dense<0.000000e+00> : vector<128xf32>
    %17 = vector.multi_reduction <add>, %16, %cst_12 [0] : vector<8x128xf32> to vector<128xf32>
    %18 = vector.shape_cast %17 : vector<128xf32> to vector<1x128xf32>
    %cst_13 = arith.constant 8.000000e+00 : f32
    %19 = vector.broadcast %cst_13 : f32 to vector<1x128xf32>
    %20 = arith.divf %18, %19 : vector<1x128xf32>
    %21 = arith.mulf %15, %15 : vector<1x128xf32>
    %22 = arith.subf %20, %21 : vector<1x128xf32>
    %cst_14 = arith.constant 0.000000e+00 : f32
    %23 = vector.broadcast %cst_14 : f32 to vector<1x128xf32>
    %24 = arith.maximumf %22, %23 : vector<1x128xf32>
    %cst_15 = arith.constant 9.99999974E-6 : f32
    %25 = vector.broadcast %cst_15 : f32 to vector<1x128xf32>
    %26 = arith.addf %24, %25 : vector<1x128xf32>
    %27 = math.rsqrt %26 : vector<1x128xf32>
    %28 = arith.mulf %6, %27 : vector<1x128xf32>
    %29 = arith.mulf %15, %28 : vector<1x128xf32>
    %30 = arith.subf %7, %29 : vector<1x128xf32>
    %31 = vector.broadcast %28 : vector<1x128xf32> to vector<8x128xf32>
    %32 = arith.mulf %4, %31 : vector<8x128xf32>
    %33 = vector.broadcast %30 : vector<1x128xf32> to vector<8x128xf32>
    %34 = arith.addf %32, %33 : vector<8x128xf32>
    %cst_16 = arith.constant 0.000000e+00 : f32
    %35 = vector.broadcast %cst_16 : f32 to vector<8x128xf32>
    %36 = arith.maximumf %34, %35 : vector<8x128xf32>
    %37 = arith.truncf %36 : vector<8x128xf32> to vector<8x128xbf16>
    %c0_17 = arith.constant 0 : index
    %c0_18 = arith.constant 0 : index
    %38 = vector.load %arg2[%c0_17, %c0_18] : memref<128x128xbf16, #tpu.memory_space<vmem>>, vector<128x128xbf16>
    %cst_19 = arith.constant dense<0.000000e+00> : vector<8x128xf32>
    %39 = tpu.matmul %37, %38, %cst_19 {dimension_numbers = #tpu.dot_dimension_numbers<[1], [0], [0], [1], [0, 0, 1, 1], [], []>} : vector<8x128xbf16>, vector<128x128xbf16>, vector<8x128xf32> -> vector<8x128xf32>
    %cst_20 = arith.constant dense<0.000000e+00> : vector<128xf32>
    %40 = vector.multi_reduction <add>, %39, %cst_20 [0] : vector<8x128xf32> to vector<128xf32>
    %41 = vector.shape_cast %40 : vector<128xf32> to vector<1x128xf32>
    %cst_21 = arith.constant 8.000000e+00 : f32
    %42 = vector.broadcast %cst_21 : f32 to vector<1x128xf32>
    %43 = arith.divf %41, %42 : vector<1x128xf32>
    %44 = arith.mulf %39, %39 : vector<8x128xf32>
    %cst_22 = arith.constant dense<0.000000e+00> : vector<128xf32>
    %45 = vector.multi_reduction <add>, %44, %cst_22 [0] : vector<8x128xf32> to vector<128xf32>
    %46 = vector.shape_cast %45 : vector<128xf32> to vector<1x128xf32>
    %cst_23 = arith.constant 8.000000e+00 : f32
    %47 = vector.broadcast %cst_23 : f32 to vector<1x128xf32>
    %48 = arith.divf %46, %47 : vector<1x128xf32>
    %49 = arith.mulf %43, %43 : vector<1x128xf32>
    %50 = arith.subf %48, %49 : vector<1x128xf32>
    %cst_24 = arith.constant 0.000000e+00 : f32
    %51 = vector.broadcast %cst_24 : f32 to vector<1x128xf32>
    %52 = arith.maximumf %50, %51 : vector<1x128xf32>
    %cst_25 = arith.constant 9.99999974E-6 : f32
    %53 = vector.broadcast %cst_25 : f32 to vector<1x128xf32>
    %54 = arith.addf %52, %53 : vector<1x128xf32>
    %55 = math.rsqrt %54 : vector<1x128xf32>
    %56 = arith.mulf %8, %55 : vector<1x128xf32>
    %57 = arith.mulf %43, %56 : vector<1x128xf32>
    %58 = arith.subf %9, %57 : vector<1x128xf32>
    %59 = vector.broadcast %56 : vector<1x128xf32> to vector<8x128xf32>
    %60 = arith.mulf %39, %59 : vector<8x128xf32>
    %61 = vector.broadcast %58 : vector<1x128xf32> to vector<8x128xf32>
    %62 = arith.addf %60, %61 : vector<8x128xf32>
    %cst_26 = arith.constant dense<0.000000e+00> : vector<128xf32>
    %63 = vector.multi_reduction <add>, %5, %cst_26 [0] : vector<8x128xf32> to vector<128xf32>
    %64 = vector.shape_cast %63 : vector<128xf32> to vector<1x128xf32>
    %cst_27 = arith.constant 8.000000e+00 : f32
    %65 = vector.broadcast %cst_27 : f32 to vector<1x128xf32>
    %66 = arith.divf %64, %65 : vector<1x128xf32>
    %67 = arith.mulf %5, %5 : vector<8x128xf32>
    %cst_28 = arith.constant dense<0.000000e+00> : vector<128xf32>
    %68 = vector.multi_reduction <add>, %67, %cst_28 [0] : vector<8x128xf32> to vector<128xf32>
    %69 = vector.shape_cast %68 : vector<128xf32> to vector<1x128xf32>
    %cst_29 = arith.constant 8.000000e+00 : f32
    %70 = vector.broadcast %cst_29 : f32 to vector<1x128xf32>
    %71 = arith.divf %69, %70 : vector<1x128xf32>
    %72 = arith.mulf %66, %66 : vector<1x128xf32>
    %73 = arith.subf %71, %72 : vector<1x128xf32>
    %cst_30 = arith.constant 0.000000e+00 : f32
    %74 = vector.broadcast %cst_30 : f32 to vector<1x128xf32>
    %75 = arith.maximumf %73, %74 : vector<1x128xf32>
    %cst_31 = arith.constant 9.99999974E-6 : f32
    %76 = vector.broadcast %cst_31 : f32 to vector<1x128xf32>
    %77 = arith.addf %75, %76 : vector<1x128xf32>
    %78 = math.rsqrt %77 : vector<1x128xf32>
    %79 = arith.mulf %10, %78 : vector<1x128xf32>
    %80 = arith.mulf %66, %79 : vector<1x128xf32>
    %81 = arith.subf %11, %80 : vector<1x128xf32>
    %82 = vector.broadcast %79 : vector<1x128xf32> to vector<8x128xf32>
    %83 = arith.mulf %5, %82 : vector<8x128xf32>
    %84 = vector.broadcast %81 : vector<1x128xf32> to vector<8x128xf32>
    %85 = arith.addf %83, %84 : vector<8x128xf32>
    %86 = arith.addf %62, %85 : vector<8x128xf32>
    %cst_32 = arith.constant 0.000000e+00 : f32
    %87 = vector.broadcast %cst_32 : f32 to vector<8x128xf32>
    %88 = arith.maximumf %86, %87 : vector<8x128xf32>
    %c0_33 = arith.constant 0 : index
    %c0_34 = arith.constant 0 : index
    %89 = vector.load %arg4[%c0_33, %c0_34] : memref<8x128xf32, #tpu.memory_space<vmem>>, vector<8x128xf32>
    tpu.vector_store %arg4[%c0_33, %c0_34], %88 {strides = array<i32>} : memref<8x128xf32, #tpu.memory_space<vmem>>, vector<8x128xf32>,
    return
  }
}

</mosaic_0001>

<bundles_post_ra>
// kernel: tpu_custom_call.1
= control target key start
LH: loop header
LB: loop body
LE: loop exit
PB: predicated region body
PF: predicated region fallthrough
CT: control target
= control target key end

     0   :  { %9 = vsyncpa [#allocation3], 0  ;;  %s754_s0 = inlined_call_operand.hbm [shape: f32[8,128], index: 0, kind: input, shape index: {}]   ;;  %s755_s1 = inlined_call_operand.hbm [shape: bf16[128,256], index: 1, kind: input, shape index: {}]   ;;  %s756_s2 = inlined_call_operand.hbm [shape: bf16[128,128], index: 2, kind: input, shape index: {}]   ;;  %s757_s3 = inlined_call_operand.hbm [shape: f32[6,128], index: 3, kind: input, shape index: {}]   ;;  %s758_s4 = inlined_call_operand.hbm [shape: f32[8,128], index: 4, kind: output, shape index: {}]  }
   0x1   :  { %10 = vsyncpa [#allocation6], 0 }
   0x2   :  { %11 = vsyncpa [#allocation9], 0  ;;  %s28_s17 = sshll.u32 %s755_s1, 4  ;;  %s29_s17 = int_to_ptr.hbm [resolvable:$true] %s28_s17 }
   0x3   :  { %12 = vsyncpa [#allocation4], 0  ;;  %s689_s18 = smov [#allocation5]   ;;  %s18_s22 = sshll.u32 %s754_s0, 4  ;;  %s19_s22 = int_to_ptr.hbm [resolvable:$true] %s18_s22 }
   0x4   :  { %s30_s19 = sshll.u32 %s689_s18, 4  ;;  %s690_s23 = smov 128   ;;  %s31_s19 = int_to_ptr.vmem [resolvable:$true] %s30_s19 }
   0x5   :  { %s691_s24 = smov 8   ;;  %s692_s25 = smov [#allocation2]  }
   0x6   :  { %36 = dma.hbm_to_vmem [thread:$0]  %s29_s17, 2048, %s31_s19, [#allocation6], %s690_s23, %s690_s23, %s691_s24  }
   0x7   :  { %s20_s26 = sshll.u32 %s692_s25, 4  ;;  %s41_s29 = sshll.u32 %s756_s2, 4  ;;  %s21_s26 = int_to_ptr.vmem [resolvable:$true] %s20_s26  ;;  %s42_s29 = int_to_ptr.hbm [resolvable:$true] %s41_s29 }
   0x8   :  { %23 = dma.hbm_to_vmem [thread:$0]  %s19_s22, 128, %s21_s26, [#allocation3]  }
   0x9   :  { %s693_s1 = smov [#allocation7]   ;;  %s55_s0 = sshll.u32 %s757_s3, 4  ;;  %s56_s0 = int_to_ptr.hbm [resolvable:$true] %s55_s0 }
   0xa   :  { %s43_s30 = sshll.u32 %s693_s1, 4  ;;  %s694_s7 = smov 64   ;;  %s44_s30 = int_to_ptr.vmem [resolvable:$true] %s43_s30 }
   0xb   :  { %s695_s8 = smov 4   ;;  %s696_s9 = smov [#allocation8]  }
   0xc   :  { %49 = dma.hbm_to_vmem [thread:$0]  %s42_s29, 1024, %s44_s30, [#allocation6], %s694_s7, %s694_s7, %s695_s8  }
   0xd   :  { %s57_s10 = sshll.u32 %s696_s9, 4  ;;  %s58_s10 = int_to_ptr.vmem [resolvable:$true] %s57_s10 }
   0xe   :  { %60 = dma.hbm_to_vmem [thread:$0]  %s56_s0, 128, %s58_s10, [#allocation9]  }
   0xf   :  { %681 = dma.done.wait [#allocation3], 128  }
  0x10   :  { %682 = vsyncadd [#allocation3], 4294967168 }
  0x11   :  { %683 = dma.done.wait [#allocation6], 3072  }
  0x12   :  { %684 = vsyncadd [#allocation6], 4294964224 }
  0x13   :  { %685 = dma.done.wait [#allocation9], 128  }
  0x14   :  { %686 = vsyncadd [#allocation9], 4294967168  ;;  %v481_v0 = vld [vmem:[#allocation5 + $0x70] sm:$0xf]  ;;  %v534_v1 = vld [vmem:[#allocation5 + $0x74] sm:$0xf0] }
  0x15   :  { %v473_v2 = vld [vmem:[#allocation5 + $0x60] sm:$0xf]  ;;  %v482_v3 = vor.u32 %v534_v1, %v481_v0  ;;  %v532_v4 = vld [vmem:[#allocation5 + $0x64] sm:$0xf0]  ;;  %v465_v6 = vld [vmem:[#allocation5 + $0x50] sm:$0xf] }
  0x16   :  { %v474_v5 = vor.u32 %v532_v4, %v473_v2  ;;  %v530_v7 = vld [vmem:[#allocation5 + $0x54] sm:$0xf0]  ;;  %v533_v8 = vld [vmem:[#allocation5 + $0x74] sm:$0xf]  ;;  %v483_v9 = vld [vmem:[#allocation5 + $0x78] sm:$0xf0] }
  0x17   :  { %175 = vmatpush.bf16.msra.mxu0 %v482_v3  ;;  %v531_v10 = vld [vmem:[#allocation5 + $0x64] sm:$0xf]  ;;  %v475_v11 = vld [vmem:[#allocation5 + $0x68] sm:$0xf0]  ;;  %v466_v12 = vor.u32 %v530_v7, %v465_v6  ;;  %v486_v13 = vor.u32 %v533_v8, %v483_v9  ;;  %v457_v14 = vld [vmem:[#allocation5 + $0x40] sm:$0xf] }
  0x18   :  { %v528_v15 = vld [vmem:[#allocation5 + $0x44] sm:$0xf0]  ;;  %v478_v16 = vor.u32 %v531_v10, %v475_v11  ;;  %v529_v17 = vld [vmem:[#allocation5 + $0x54] sm:$0xf]  ;;  %v467_v18 = vld [vmem:[#allocation5 + $0x58] sm:$0xf0] }
  0x19   :  { %188 = vmatpush.bf16.msra.mxu1 %v486_v13  ;;  %v458_v19 = vor.u32 %v528_v15, %v457_v14  ;;  %v449_v20 = vld [vmem:[#allocation5 + $0x30] sm:$0xf]  ;;  %v526_v21 = vld [vmem:[#allocation5 + $0x34] sm:$0xf0]  ;;  %v470_v22 = vor.u32 %v529_v17, %v467_v18  ;;  %v527_v23 = vld [vmem:[#allocation5 + $0x44] sm:$0xf] }
  0x1a   :  { %v459_v24 = vld [vmem:[#allocation5 + $0x48] sm:$0xf0]  ;;  %v450_v25 = vor.u32 %v526_v21, %v449_v20  ;;  %v441_v26 = vld [vmem:[#allocation5 + $0x20] sm:$0xf]  ;;  %v524_v27 = vld [vmem:[#allocation5 + $0x24] sm:$0xf0] }
  0x1b   :  { %176 = vmatpush.bf16.msra.mxu0 %v474_v5  ;;  %v462_v28 = vor.u32 %v527_v23, %v459_v24  ;;  %v442_v29 = vor.u32 %v524_v27, %v441_v26  ;;  %v433_v30 = vld [vmem:[#allocation5 + $0x10] sm:$0xf]  ;;  %v522_v31 = vld [vmem:[#allocation5 + $0x14] sm:$0xf0]  ;;  %v425_v33 = vld [vmem:[#allocation5] sm:$0xf] }
  0x1c   :  { %v434_v32 = vor.u32 %v522_v31, %v433_v30  ;;  %v520_v34 = vld [vmem:[#allocation5 + $0x4] sm:$0xf0]  ;;  %v77_v36 = vld [vmem:[#allocation2] sm:$0xff]  ;;  %v525_v38 = vld [vmem:[#allocation5 + $0x34] sm:$0xf]  ;;  %v697_v51 = vmov 8.0  }
  0x1d   :  { %189 = vmatpush.bf16.msra.mxu1 %v478_v16  ;;  %v426_v35 = vor.u32 %v520_v34, %v425_v33  ;;  %v78_v37 = vpack.c.bf16 %v77_v36, %v77_v36  ;;  %v451_v39 = vld [vmem:[#allocation5 + $0x38] sm:$0xf0]  ;;  %v523_v41 = vld [vmem:[#allocation5 + $0x24] sm:$0xf]  ;;  %v443_v42 = vld [vmem:[#allocation5 + $0x28] sm:$0xf0]  ;;  %553 = vrcp.f32 %v697_v51 }
  0x1e   :  { %v454_v40 = vor.u32 %v525_v38, %v451_v39  ;;  %v446_v43 = vor.u32 %v523_v41, %v443_v42  ;;  %v521_v44 = vld [vmem:[#allocation5 + $0x14] sm:$0xf]  ;;  %v435_v45 = vld [vmem:[#allocation5 + $0x18] sm:$0xf0]  ;;  %v519_v47 = vld [vmem:[#allocation5 + $0x4] sm:$0xf] }
  0x1f   :  { %177 = vmatpush.bf16.msra.mxu0 %v466_v12  ;;  %v438_v46 = vor.u32 %v521_v44, %v435_v45  ;;  %v427_v48 = vld [vmem:[#allocation5 + $0x8] sm:$0xf0]  ;;  %v542_v50 = vld [vmem:[#allocation7 + $0x38] sm:$0xff]  ;;  %v541_v52 = vld [vmem:[#allocation7 + $0x30] sm:$0xff]  ;;  %s698_s2 = smov [#allocation10]   ;;  %s411_s13 = sshll.u32 %s758_s4, 4  ;;  %s412_s13 = int_to_ptr.hbm [resolvable:$true] %s411_s13 }
  0x20   :  { %v430_v49 = vor.u32 %v519_v47, %v427_v48  ;;  %316 = vmatpush.bf16.msra.mxu2 %v542_v50  ;;  %v540_v53 = vld [vmem:[#allocation7 + $0x28] sm:$0xff]  ;;  %v539_v55 = vld [vmem:[#allocation7 + $0x20] sm:$0xff]  ;;  %v538_v57 = vld [vmem:[#allocation7 + $0x18] sm:$0xff]  ;;  %s409_s3 = sshll.u32 %s698_s2, 4  ;;  %s410_s3 = int_to_ptr.vmem [resolvable:$true] %s409_s3 }
  0x21   :  { %190 = vmatpush.bf16.msra.mxu1 %v470_v22  ;;  %v537_v62 = vld [vmem:[#allocation7 + $0x10] sm:$0xff]  ;;  %v536_v4 = vld [vmem:[#allocation7 + $0x8] sm:$0xff]  ;;  %v535_v11 = vld [vmem:[#allocation7] sm:$0xff] }
  0x22   :  { %v201_v27 = vld [vmem:[#allocation8] sm:$0x1]  ;;  %v202_v31 = vld [vmem:[#allocation8 + $0x1] sm:$0x1] }
  0x23   :  { %178 = vmatpush.bf16.msra.mxu0 %v458_v19  ;;  %v554_v54 = vpop.eup %553 }
  0x24   :  { %317 = vmatpush.bf16.msra.mxu2 %v541_v52  ;;  %v214_v56 = vmul.f32 8.0, %v554_v54  ;;  %vm218_vm0 = vweird.f32 %v554_v54 }
  0x25   :  { %191 = vmatpush.bf16.msra.mxu1 %v462_v28 }
  0x26   :  { %v215_v58 = vsub.f32 1.0, %v214_v56 }
  0x27   :  { %179 = vmatpush.bf16.msra.mxu0 %v450_v25 }
  0x28   :  { %318 = vmatpush.bf16.msra.mxu2 %v540_v53  ;;  %v216_v63 = vmul.f32 %v554_v54, %v215_v58 }
  0x29   :  { %192 = vmatpush.bf16.msra.mxu1 %v454_v40 }
  0x2a   :  { %v217_v5 = vadd.f32 %v554_v54, %v216_v63 }
  0x2b   :  { %180 = vmatpush.bf16.msra.mxu0 %v442_v29 }
  0x2c   :  { %319 = vmatpush.bf16.msra.mxu2 %v539_v55  ;;  %v736_v12 = vsel %vm218_vm0, %v554_v54, %v217_v5 }
  0x2d   :  { %193 = vmatpush.bf16.msra.mxu1 %v446_v43 }
  0x2f   :  { %181 = vmatpush.bf16.msra.mxu0 %v434_v32 }
  0x30   :  { %320 = vmatpush.bf16.msra.mxu2 %v538_v57 }
  0x31   :  { %194 = vmatpush.bf16.msra.mxu1 %v438_v46 }
  0x33   :  { %182 = vmatpush.bf16.msra.mxu0 %v426_v35 }
  0x34   :  { %321 = vmatpush.bf16.msra.mxu2 %v537_v62 }
  0x35   :  { %195 = vmatpush.bf16.msra.mxu1 %v430_v49 }
  0x36   :  { %183 = vmatmul.bf16.vlgmr.msra.gmra.mxu0 %v78_v37 }
  0x38   :  { %196 = vmatmul.bf16.vlgmr.msra.gmra.mxu1 %v78_v37  ;;  %322 = vmatpush.bf16.msra.mxu2 %v536_v4 }
  0x3c   :  { %323 = vmatpush.bf16.msra.mxu2 %v535_v11 }
  0xb3   :  { %v184_v59 = vpop.f32.mrf.mxu0 }
  0xb4   :  { %v207_v60 = vrot.slane %v184_v59, 4  ;;  %v221_v61 = vmul.f32 %v184_v59, %v184_v59 }
  0xb5   :  { %v740_v40 = vpop.f32.mrf.mxu1 }
  0xb6   :  { %v208_v0 = vadd.f32 %v207_v60, %v184_v59  ;;  %v222_v1 = vrot.slane %v221_v61, 4  ;;  %v365_v42 = vrot.slane %v740_v40, 4  ;;  %v372_v43 = vmul.f32 %v740_v40, %v740_v40 }
  0xb8   :  { %v209_v2 = vrot.slane %v208_v0, 2  ;;  %v223_v3 = vadd.f32 %v222_v1, %v221_v61  ;;  %v366_v44 = vadd.f32 %v365_v42, %v740_v40  ;;  %v373_v45 = vrot.slane %v372_v43, 4 }
  0xba   :  { %v210_v6 = vadd.f32 %v209_v2, %v208_v0  ;;  %v224_v7 = vrot.slane %v223_v3, 2  ;;  %v367_v46 = vrot.slane %v366_v44, 2  ;;  %v374_v47 = vadd.f32 %v373_v45, %v372_v43 }
  0xbb   :  { %v186_v8 = vpop.f32.mrf.mxu0 }
  0xbc   :  { %v211_v9 = vrot.slane %v210_v6, 1  ;;  %v225_v10 = vadd.f32 %v224_v7, %v223_v3  ;;  %v368_v48 = vadd.f32 %v367_v46, %v366_v44  ;;  %v375_v49 = vrot.slane %v374_v47, 2 }
  0xbd   :  { %v199_v41 = vpop.f32.mrf.mxu1 }
  0xbe   :  { %v212_v13 = vadd.f32 %v211_v9, %v210_v6  ;;  %v226_v14 = vrot.slane %v225_v10, 1  ;;  %v369_v50 = vrot.slane %v368_v48, 1  ;;  %v376_v51 = vadd.f32 %v375_v49, %v374_v47  ;;  %v204_v41 = vld [vmem:[#allocation8 + $0x3] sm:$0x1] }
  0xc0   :  { %v227_v15 = vadd.f32 %v226_v14, %v225_v10  ;;  %v220_v16 = vmul.f32 %v736_v12, %v212_v13  ;;  %v370_v52 = vadd.f32 %v369_v50, %v368_v48  ;;  %v377_v53 = vrot.slane %v376_v51, 1 }
  0xc2   :  { %v228_v17 = vmul.f32 %v227_v15, %v736_v12  ;;  %v229_v18 = vmul.f32 %v220_v16, %v220_v16  ;;  %v371_v54 = vmul.f32 %v370_v52, %v736_v12  ;;  %v378_v55 = vadd.f32 %v377_v53, %v376_v51 }
  0xc4   :  { %v230_v19 = vsub.f32 %v228_v17, %v229_v18  ;;  %v379_v56 = vmul.f32 %v378_v55, %v736_v12  ;;  %v380_v57 = vmul.f32 %v371_v54, %v371_v54 }
  0xc6   :  { %v231_v20 = vmax.f32 %v230_v19, 0.0  ;;  %v381_v58 = vsub.f32 %v379_v56, %v380_v57 }
  0xc8   :  { %v232_v21 = vadd.f32 1e-05, %v231_v20 }
  0xca   :  { %555 = vrsqrt.f32 %v232_v21  ;;  %vm239_vm2 = vweird.f32 %v232_v21 }
  0xd0   :  { %v556_v22 = vpop.eup %555 }
  0xd1   :  { %v234_v23 = vmul.f32 %v556_v22, %v232_v21  ;;  %vm240_vm1 = vweird.f32 %v556_v22 }
  0xd2   :  { %vm241_vm3 = vmor %vm239_vm2, %vm240_vm1 }
  0xd3   :  { %v235_v24 = vmul.f32 %v556_v22, %v234_v23 }
  0xd5   :  { %v236_v25 = vmul.f32 0.5, %v235_v24 }
  0xd7   :  { %v237_v26 = vsub.f32 1.5, %v236_v25 }
  0xd9   :  { %v238_v28 = vmul.f32 %v556_v22, %v237_v26  ;;  %v205_v26 = vld [vmem:[#allocation8 + $0x4] sm:$0x1] }
  0xdb   :  { %v242_v29 = vsel %vm241_vm3, %v556_v22, %v238_v28 }
  0xdc   :  { %v243_v30 = vmul.f32 %v242_v29, %v201_v27 }
  0xde   :  { %v244_v32 = vmul.f32 %v243_v30, %v220_v16  ;;  %v246_v33 = vperm.slane %v243_v30, 0 }
  0xe0   :  { %v245_v34 = vsub.f32 %v202_v31, %v244_v32  ;;  %v247_v35 = vmul.f32 %v246_v33, %v184_v59  ;;  %v382_v59 = vmax.f32 %v381_v58, 0.0  ;;  %v206_v33 = vld [vmem:[#allocation8 + $0x5] sm:$0x1] }
  0xe2   :  { %v248_v36 = vperm.slane %v245_v34, 0  ;;  %v383_v60 = vadd.f32 1e-05, %v382_v59  ;;  %v203_v34 = vld [vmem:[#allocation8 + $0x2] sm:$0x1] }
  0xe4   :  { %v249_v37 = vadd.f32 %v248_v36, %v247_v35  ;;  %557 = vrsqrt.f32 %v383_v60  ;;  %vm390_vm4 = vweird.f32 %v383_v60 }
  0xe6   :  { %v250_v38 = vmax.f32 %v249_v37, 0.0 }
  0xe8   :  { %v251_v39 = vpack.c.bf16 %v250_v38, %v250_v38 }
  0xea   :  { %324 = vmatmul.bf16.vlgmr.msra.gmra.mxu2 %v251_v39  ;;  %v558_v4 = vpop.eup %557 }
  0xeb   :  { %v385_v10 = vmul.f32 %v558_v4, %v383_v60  ;;  %vm391_vm5 = vweird.f32 %v558_v4 }
  0xec   :  { %vm392_vm6 = vmor %vm390_vm4, %vm391_vm5 }
  0xed   :  { %v386_v16 = vmul.f32 %v558_v4, %v385_v10 }
  0xef   :  { %v387_v20 = vmul.f32 0.5, %v386_v16 }
  0xf1   :  { %v388_v23 = vsub.f32 1.5, %v387_v20 }
  0xf3   :  { %v389_v24 = vmul.f32 %v558_v4, %v388_v23 }
  0xf5   :  { %v393_v27 = vsel %vm392_vm6, %v558_v4, %v389_v24 }
  0xf6   :  { %v394_v30 = vmul.f32 %v393_v27, %v205_v26 }
  0xf8   :  { %v397_v38 = vperm.slane %v394_v30, 0 }
  0xfa   :  { %v398_v44 = vmul.f32 %v397_v38, %v740_v40 }
 0x16d   :  { %v325_v61 = vpop.f32.mrf.mxu2 }
 0x16e   :  { %v329_v62 = vrot.slane %v325_v61, 4  ;;  %v336_v63 = vmul.f32 %v325_v61, %v325_v61 }
 0x170   :  { %v330_v0 = vadd.f32 %v329_v62, %v325_v61  ;;  %v337_v1 = vrot.slane %v336_v63, 4 }
 0x172   :  { %v331_v2 = vrot.slane %v330_v0, 2  ;;  %v338_v3 = vadd.f32 %v337_v1, %v336_v63 }
 0x174   :  { %v332_v5 = vadd.f32 %v331_v2, %v330_v0  ;;  %v339_v6 = vrot.slane %v338_v3, 2 }
 0x175   :  { %v327_v7 = vpop.f32.mrf.mxu2 }
 0x176   :  { %v333_v8 = vrot.slane %v332_v5, 1  ;;  %v340_v9 = vadd.f32 %v339_v6, %v338_v3 }
 0x178   :  { %v334_v11 = vadd.f32 %v333_v8, %v332_v5  ;;  %v341_v13 = vrot.slane %v340_v9, 1 }
 0x17a   :  { %v335_v14 = vmul.f32 %v334_v11, %v736_v12  ;;  %v342_v15 = vadd.f32 %v341_v13, %v340_v9 }
 0x17c   :  { %v343_v17 = vmul.f32 %v342_v15, %v736_v12  ;;  %v344_v18 = vmul.f32 %v335_v14, %v335_v14  ;;  %v395_v12 = vmul.f32 %v394_v30, %v371_v54 }
 0x17e   :  { %v345_v19 = vsub.f32 %v343_v17, %v344_v18  ;;  %v396_v37 = vsub.f32 %v206_v33, %v395_v12 }
 0x180   :  { %v346_v21 = vmax.f32 %v345_v19, 0.0  ;;  %v399_v45 = vperm.slane %v396_v37, 0 }
 0x182   :  { %v347_v22 = vadd.f32 1e-05, %v346_v21  ;;  %v400_v49 = vadd.f32 %v399_v45, %v398_v44 }
 0x184   :  { %559 = vrsqrt.f32 %v347_v22  ;;  %vm354_vm8 = vweird.f32 %v347_v22 }
 0x18a   :  { %v560_v25 = vpop.eup %559 }
 0x18b   :  { %v349_v28 = vmul.f32 %v560_v25, %v347_v22  ;;  %vm355_vm7 = vweird.f32 %v560_v25 }
 0x18c   :  { %vm356_vm9 = vmor %vm354_vm8, %vm355_vm7 }
 0x18d   :  { %v350_v29 = vmul.f32 %v560_v25, %v349_v28 }
 0x18f   :  { %v351_v31 = vmul.f32 0.5, %v350_v29 }
 0x191   :  { %v352_v32 = vsub.f32 1.5, %v351_v31 }
 0x193   :  { %v353_v35 = vmul.f32 %v560_v25, %v352_v32 }
 0x195   :  { %v357_v36 = vsel %vm356_vm9, %v560_v25, %v353_v35 }
 0x196   :  { %v358_v39 = vmul.f32 %v357_v36, %v203_v34 }
 0x198   :  { %v359_v42 = vmul.f32 %v358_v39, %v335_v14  ;;  %v361_v43 = vperm.slane %v358_v39, 0 }
 0x19a   :  { %v360_v46 = vsub.f32 %v204_v41, %v359_v42  ;;  %v362_v47 = vmul.f32 %v361_v43, %v325_v61 }
 0x19c   :  { %v363_v48 = vperm.slane %v360_v46, 0 }
 0x19e   :  { %v364_v50 = vadd.f32 %v363_v48, %v362_v47 }
 0x1a0   :  { %v401_v51 = vadd.f32 %v400_v49, %v364_v50 }
 0x1a2   :  { %v402_v52 = vmax.f32 %v401_v51, 0.0 }
 0x1a4   :  { %403 = vst [vmem:[#allocation10] sm:$0xff] %v402_v52 }
 0x1a5   :  { %414 = dma.vmem_to_hbm [thread:$0]  %s410_s3, 128, %s412_s13, [#allocation4]  }
 0x1a6   :  { %687 = dma.done.wait [#allocation4], 128  }
 0x1a7   :  { %688 = vsyncadd [#allocation4], 4294967168 }
 0x1a8   :  { %419 = vsyncpa [#allocation3], 1 }
 0x1a9   :  { %420 = vsyncpa [#allocation6], 1 }
 0x1aa   :  { %421 = vsyncpa [#allocation9], 1 }
 0x1ab   :  { %422 = vsyncpa [#allocation4], 1 }

</bundles_post_ra>
